<compile_context>
chip_gen: v7x
topology: tpu7x:2x2x1
jax: 0.10.0
libtpu: 0.0.40
codegen_flags: <defaults>
</compile_context>

<pallas_src>
import jax
import jax.numpy as jnp
from jax.experimental import pallas as pl
from jax.experimental.pallas import tpu as pltpu

_LANE = 128
_SUBLANE = 8


def _round_up(x, m):
    return ((x + m - 1) // m) * m


def _fused_head_kernel(x_ref, w_ref, b_ref, o_ref):
    # One MXU matmul per batch tile: (TB, K)bf16 @ (K, Np)bf16 -> f32 acc,
    # bias add in f32, lane-dense store (Np % 128 == 0 -> unmasked vst).
    acc = jnp.dot(x_ref[...], w_ref[...], preferred_element_type=jnp.float32)
    o_ref[...] = (acc + b_ref[...]).astype(o_ref.dtype)


def fuse_heads(params, lane_pad=_LANE):
    """Collapse the chained two-layer affine heads into one matrix and bias.

    params: list of (w1, b1, w2, b2) per taxon; w* as (in, out), b* as (1, out).
    Returns (M, d, class_sizes) with M: (in_features, padded_total),
    d: (1, padded_total), padded_total a multiple of `lane_pad`.
    Exact up to f32 rounding because every head is purely affine.
    """
    hi = jax.lax.Precision.HIGHEST
    Ms, ds, class_sizes = [], [], []
    M_prev = d_prev = None
    for (w1, b1, w2, b2) in params:
        W = jnp.dot(w1, w2, precision=hi)                 # (fan_in, classes)
        c = jnp.dot(b1, w2, precision=hi) + b2            # (1, classes)
        if M_prev is None:
            M_i, d_i = W, c
        else:
            M_i = jnp.dot(M_prev, W, precision=hi)
            d_i = jnp.dot(d_prev, W, precision=hi) + c
        Ms.append(M_i)
        ds.append(d_i)
        class_sizes.append(int(w2.shape[1]))
        M_prev, d_prev = M_i, d_i

    M = jnp.concatenate(Ms, axis=1).astype(jnp.float32)
    d = jnp.concatenate(ds, axis=1).astype(jnp.float32)
    total = int(M.shape[1])
    padded_total = _round_up(total, lane_pad)
    if padded_total != total:
        M = jnp.pad(M, ((0, 0), (0, padded_total - total)))
        d = jnp.pad(d, ((0, 0), (0, padded_total - total)))
    return M, d, class_sizes


def hidden_linear_forward(x, fused_w, fused_b, class_sizes, *, tb=512):
    """Fused forward: returns [out_0, ..., out_{n-1}] (per-taxon logits)."""
    B, K = x.shape
    Np = int(fused_w.shape[1])
    out_dtype = x.dtype

    # Batch tile: multiple of 8 sublanes; pad batch to a whole number of tiles.
    tb = _round_up(max(_SUBLANE, min(int(tb), _round_up(B, _SUBLANE))), _SUBLANE)
    b_pad = _round_up(B, tb)
    if b_pad != B:
        x = jnp.pad(x, ((0, b_pad - B), (0, 0)))
    grid = (b_pad // tb,)

    # bf16 operands (halved DMA bytes, full MXU rate on v6e/v7x); f32 bias/acc.
    x_lo = x.astype(jnp.bfloat16)
    w_lo = fused_w.astype(jnp.bfloat16)
    b_f32 = fused_b.astype(jnp.float32)

    itemsize_out = jnp.dtype(out_dtype).itemsize
    flops = 2 * b_pad * K * Np
    bytes_accessed = (b_pad * K * 2) + (K * Np * 2) + (Np * 4) + (b_pad * Np * itemsize_out)

    # 2x double-buffered x/out tiles + resident fused weight/bias (+ headroom).
    vmem_need = 2 * (tb * K * 2 + tb * Np * 4) + (K * Np * 2) + (Np * 4)
    vmem_limit = int(min(64 << 20, max(2 * vmem_need, 8 << 20)))

    out = pl.pallas_call(
        _fused_head_kernel,
        out_shape=jax.ShapeDtypeStruct((b_pad, Np), out_dtype),
        grid=grid,
        in_specs=[
            pl.BlockSpec((tb, K), lambda i: (i, 0)),
            pl.BlockSpec((K, Np), lambda i: (0, 0)),   # weights stay VMEM-resident
            pl.BlockSpec((1, Np), lambda i: (0, 0)),   # bias stays VMEM-resident
        ],
        out_specs=pl.BlockSpec((tb, Np), lambda i: (i, 0)),
        compiler_params=pltpu.CompilerParams(
            dimension_semantics=("parallel",),
            vmem_limit_bytes=vmem_limit,
        ),
        cost_estimate=pl.CostEstimate(
            flops=int(flops), transcendentals=0, bytes_accessed=int(bytes_accessed)
        ),
    )(x_lo, w_lo, b_f32)

    out = out[:B]
    outputs, off = [], 0
    for c in class_sizes:
        outputs.append(out[:, off:off + c])
        off += c
    return outputs


class HiddenLinearModel:
    """JAX/Pallas port of the PyTorch HiddenLinearModel head structure."""

    def __init__(self, key, in_features, classes_per_taxon, hidden_features_per_taxon):
        assert len(classes_per_taxon) > 0
        assert len(classes_per_taxon) == len(hidden_features_per_taxon)
        # TODO(synk): backbone trunk (model minus .fc) is not representable
        # generically; this class holds only the fc head + aux_fcs parameters.
        self.params = []
        fan_in = in_features
        for hidden_num, class_num in zip(hidden_features_per_taxon, classes_per_taxon):
            key, k1, k2, k3, k4 = jax.random.split(key, 5)
            lim1 = 1.0 / (fan_in ** 0.5)
            w1 = jax.random.uniform(k1, (fan_in, hidden_num), jnp.float32, -lim1, lim1)
            b1 = jax.random.uniform(k2, (1, hidden_num), jnp.float32, -lim1, lim1)
            lim2 = 1.0 / (hidden_num ** 0.5)
            w2 = jax.random.uniform(k3, (hidden_num, class_num), jnp.float32, -lim2, lim2)
            b2 = jax.random.uniform(k4, (1, class_num), jnp.float32, -lim2, lim2)
            self.params.append((w1, b1, w2, b2))
            fan_in = class_num
        # Collapse the affine head chain ONCE at init (not per forward call).
        self.fused_w, self.fused_b, self.class_sizes = fuse_heads(self.params)

    def forward(self, x, *, tb=512):
        return hidden_linear_forward(x, self.fused_w, self.fused_b, self.class_sizes, tb=tb)

    __call__ = forward


if __name__ == "__main__":
    key = jax.random.PRNGKey(0)
    batch = 100                      # not a multiple of the tile -> exercises padding
    in_features = 256
    hidden_features_per_taxon = [128, 64, 32]
    classes_per_taxon = [64, 32, 16]

    model = HiddenLinearModel(
        key, in_features, classes_per_taxon, hidden_features_per_taxon
    )

    kx = jax.random.fold_in(key, 12345)
    x = jax.random.normal(kx, (batch, in_features), dtype=jnp.float32)

    # Small tile so the test actually runs a multi-step "parallel" grid.
    outputs = model(x, tb=32)
    outputs = [jax.block_until_ready(o) for o in outputs]

    # Pure-JAX f32 reference of the original chained two-layer heads.
    hi = jax.lax.Precision.HIGHEST
    refs = []
    h = x
    for (w1, b1, w2, b2) in model.params:
        h = jnp.dot(jnp.dot(h, w1, precision=hi) + b1, w2, precision=hi) + b2
        refs.append(h)

    assert len(outputs) == len(classes_per_taxon)
    for got, ref, c in zip(outputs, refs, classes_per_taxon):
        assert got.shape == (batch, c) and got.dtype == x.dtype
        assert bool(jnp.allclose(got, ref, rtol=2e-2, atol=2e-2)), float(
            jnp.max(jnp.abs(got - ref))
        )

    print("KERNEL_OK")
</pallas_src>

<mosaic_0001>
module attributes {stable_mosaic.version = 11 : i64} {
  func.func @_fused_head_kernel(%arg0: i32, %arg1: memref<32x256xbf16, #tpu.memory_space<vmem>>, %arg2: memref<256x128xbf16, #tpu.memory_space<vmem>>, %arg3: memref<1x128xf32, #tpu.memory_space<vmem>>, %arg4: memref<32x128xf32, #tpu.memory_space<vmem>>) attributes {dimension_semantics = [#tpu.dimension_semantics<parallel>], iteration_bounds = array<i64: 4>, scalar_prefetch = 0 : i64, scratch_operands = 0 : i64, tpu.core_type = #tpu.core_type<tc>, window_params = [{transform_indices = @transform_0, window_bounds = array<i64: 32, 256>}, {pipeline_mode = #tpu.pipeline_mode<synchronous>, transform_indices = @transform_1, window_bounds = array<i64: 256, 128>}, {pipeline_mode = #tpu.pipeline_mode<synchronous>, transform_indices = @transform_2, window_bounds = array<i64: 1, 128>}, {transform_indices = @transform_3, window_bounds = array<i64: 32, 128>}]} {
    %c0 = arith.constant 0 : index
    %c0_0 = arith.constant 0 : index
    %0 = vector.load %arg1[%c0, %c0_0] : memref<32x256xbf16, #tpu.memory_space<vmem>>, vector<32x256xbf16>
    %c0_1 = arith.constant 0 : index
    %c0_2 = arith.constant 0 : index
    %1 = vector.load %arg2[%c0_1, %c0_2] : memref<256x128xbf16, #tpu.memory_space<vmem>>, vector<256x128xbf16>
    %cst = arith.constant dense<0.000000e+00> : vector<32x128xf32>
    %2 = tpu.matmul %0, %1, %cst {dimension_numbers = #tpu.dot_dimension_numbers<[1], [0], [0], [1], [0, 0, 1, 1], [], []>} : vector<32x256xbf16>, vector<256x128xbf16>, vector<32x128xf32> -> vector<32x128xf32>
    %c0_3 = arith.constant 0 : index
    %c0_4 = arith.constant 0 : index
    %3 = vector.load %arg3[%c0_3, %c0_4] : memref<1x128xf32, #tpu.memory_space<vmem>>, vector<1x128xf32>
    %4 = vector.broadcast %3 : vector<1x128xf32> to vector<32x128xf32>
    %5 = arith.addf %2, %4 : vector<32x128xf32>
    %c0_5 = arith.constant 0 : index
    %c0_6 = arith.constant 0 : index
    %6 = vector.load %arg4[%c0_5, %c0_6] : memref<32x128xf32, #tpu.memory_space<vmem>>, vector<32x128xf32>
    tpu.vector_store %arg4[%c0_5, %c0_6], %5 {strides = array<i32>} : memref<32x128xf32, #tpu.memory_space<vmem>>, vector<32x128xf32>,
    return
  }
  func.func @transform_0(%arg0: i32) -> (i32, i32) {
    %c0_i32 = arith.constant 0 : i32
    %c0_i32_0 = arith.constant 0 : i32
    return %arg0, %c0_i32 : i32, i32
  }
  func.func @transform_1(%arg0: i32) -> (i32, i32) {
    %c0_i32 = arith.constant 0 : i32
    %c0_i32_0 = arith.constant 0 : i32
    %c0_i32_1 = arith.constant 0 : i32
    return %c0_i32, %c0_i32_0 : i32, i32
  }
  func.func @transform_2(%arg0: i32) -> (i32, i32) {
    %c0_i32 = arith.constant 0 : i32
    %c0_i32_0 = arith.constant 0 : i32
    %c0_i32_1 = arith.constant 0 : i32
    return %c0_i32, %c0_i32_0 : i32, i32
  }
  func.func @transform_3(%arg0: i32) -> (i32, i32) {
    %c0_i32 = arith.constant 0 : i32
    %c0_i32_0 = arith.constant 0 : i32
    return %arg0, %c0_i32 : i32, i32
  }
}

</mosaic_0001>

<bundles_post_ra>
// kernel: tpu_custom_call.1
= control target key start
LH: loop header
LB: loop body
LE: loop exit
PB: predicated region body
PF: predicated region fallthrough
CT: control target
= control target key end

     0   :  { %8 = vsyncpa [#allocation3], 0  ;;  %s1051_s0 = inlined_call_operand.hbm [shape: bf16[128,256], index: 0, kind: input, shape index: {}]   ;;  %s1052_s1 = inlined_call_operand.hbm [shape: bf16[256,128], index: 1, kind: input, shape index: {}]   ;;  %s1053_s2 = inlined_call_operand.vmem [shape: f32[1,128], index: 2, kind: input, shape index: {}]   ;;  %s1054_s3 = inlined_call_operand.hbm [shape: f32[128,128], index: 3, kind: output, shape index: {}]  }
   0x1   :  { %10 = vsyncpa [#allocation3 + $0x1], 0 }
   0x2   :  { %11 = vsyncpa [#allocation6], 0 }
   0x3   :  { %12 = vsyncpa [#allocation4], 0 }
   0x4   :  { %14 = vsyncpa [#allocation4 + $0x1], 0  ;;  %s846_s12 = smov 0   ;;  %s848_s13 = smov 0  }
   0x5   :  { %s850_s14 = smov 0   ;;  %s852_s15 = smov 0  }
   0x6 LB: > { %s867_s16 = sadd.s32 4294967295, %s815_s15   ;;  %s517_s17 = sadd.s32 4294967294, %s815_s15   ;;  %s815_s15 = sphi %s852_s15, %s1073_s15   ;;  %s811_s14 = sphi %s850_s14, %s1072_s14   ;;  %s807_s13 = sphi %s848_s13, %s1071_s13   ;;  %s803_s12 = sphi %s846_s12, %s1070_s12  }
   0x7   : > { %p40_p0 = scmp.ne.s32.totalorder %s807_s13, %s803_s12  ;;  %p1055_p1 = scmp.eq.s32.totalorder %s867_s16, 0 }
   0x8   : > { %p112_p3 = scmp.eq.s32.totalorder %s517_s17, 3  ;;  %p518_p5 = scmp.ge.s32.totalorder %s815_s15, 1 }
   0x9   : > { %p876_p4 = por %p1055_p1, %p40_p0  ;;  %p119_p7 = scmp.lt.s32.totalorder %s815_s15, 5 }
   0xa   : > { %p881_p6 = por %p112_p3, %p40_p0  ;;  %s817_s21 = smov [#allocation5]  }
   0xb   : > { %s1058_s18 = scalar_select %p876_p4, 1, 0 }
   0xc   : > { %s1059_s19 = scalar_select %p881_p6, 1, 0 }
   0xd   : > { %p886_p8 = pnand %p518_p5, %p119_p7  ;;  %s131_s22 = sshll.u32 %s817_s21, 4  ;;  %s132_s22 = int_to_ptr.vmem [resolvable:$true] %s131_s22 }
   0xe   : > { %s899_s24 = sadd.s32 1, %s815_s15   ;;  %s27_s25 = sadd.s32 1, %s811_s14 }
   0xf   : > { %s1060_s20 = scalar_select %p886_p8, 1, 0 }
  0x10   : > { %p610_p9 = pneg %p886_p8  ;;  %s24_s26 = ssub.s32 %s815_s15, %s899_s24 }
  0x11   : > { %s687_s29 = scalar_lea.hbm %s1052_s1, 2048 }
  0x12   : > { %p894_p10 = pnand %p610_p9, %p1055_p1  ;;  %p688_p11 = scmp.ne.s32.totalorder %s1052_s1, %s687_s29 }
  0x13   : > { %p694_p3 = scmp.lt.u32.totalorder %s687_s29, %s1052_s1 }
  0x14   : > { %p689_p12 = pneg %p894_p10 }
  0x16   : > { %p690_p13 = pnand %p689_p12, %p688_p11 }
  0x18   : > { %p691_p0 = pneg %p690_p13 }
  0x1a   : > { %p696_p5 = pnand %p694_p3, %p691_p0 }
  0x1c   : > { %699 = shalt.err (!%p696_p5)
}
  0x1d   : > { %s700_s7 = scalar_lea.vmem %s132_s22, 2048  ;;  %p708_p2 = scmp.lt.s32.totalorder %s132_s22, %s132_s22 }
  0x1e   : > { %p701_p7 = scmp.ne.s32.totalorder %s132_s22, %s700_s7  ;;  %p709_p6 = scmp.lt.s32.totalorder %s700_s7, %s700_s7 }
  0x20   : > { %p703_p9 = pnand %p701_p7, %p689_p12  ;;  %p710_p4 = por %p709_p6, %p708_p2 }
  0x22   : > { %p704_p1 = pneg %p703_p9 }
  0x24   : > { %p711_p8 = pnand %p710_p4, %p704_p1 }
  0x26   : > { %714 = shalt.err (!%p711_p8)
}
  0x27   : > { %s818_s8 = smov 64   ;;  %s819_s9 = smov 4  }
  0x28   : > { %613 = dma.hbm_to_vmem [thread:$0]  (!%p894_p10), %s1052_s1, 2048, %s132_s22, [#allocation6], %s818_s8, %s818_s8, %s819_s9  }
  0x29   : > { %p25_p11 = scmp.eq.s32.totalorder %s24_s26, 0  ;;  %p34_p2 = scmp.ne.s32.totalorder %s811_s14, %s807_s13 }
  0x2a   : > { %p35_p1 = scmp.eq.s32.totalorder %s815_s15, 0  ;;  %p623_p4 = scmp.lt.s32.totalorder %s815_s15, 4 }
  0x2b   : > { %s925_s17 = scalar_select %p25_p11, %s811_s14, %s27_s25  }
  0x2c   : > { %p36_p6 = por %p35_p1, %p34_p2  ;;  %p1062_p8 = scmp.eq.s32.totalorder %s867_s16, 3 }
  0x2d   : > { %s148_s27 = sand.u32 1, %s811_s14   ;;  %s556_s28 = sshll.u32 %s815_s15, 9 }
  0x2e   : > { %p929_p12 = por %p1062_p8, %p34_p2  ;;  %s521_s29 = sshll.u32 %s148_s27, 5 }
  0x2f   : > { %s938_s4 = scalar_lea.hbm %s1051_s0, %s556_s28  ;;  %s152_s22 = scalar_lea.vmem [#allocation2], %s521_s29 }
  0x30   : > { %s160_s25 = sshll.u32 %s152_s22, 4  ;;  %p940_p10 = pnand %p623_p4, %p36_p6  ;;  %s944_s25 = int_to_ptr.vmem [resolvable:$true] %s160_s25 }
  0x31   : > { %s946_s5 = scalar_lea.sflag [#allocation3], %s148_s27  ;;  %s715_s6 = scalar_lea.hbm %s938_s4, 512 }
  0x32   : > { %p716_p13 = scmp.ne.s32.totalorder %s938_s4, %s715_s6  ;;  %p717_p0 = pneg %p940_p10 }
  0x33   : > { %s720_s9 = scalar_lea.hbm %s1051_s0, 2048  ;;  %p721_p7 = scmp.lt.u32.totalorder %s938_s4, %s1051_s0 }
  0x34   : > { %p718_p3 = pnand %p717_p0, %p716_p13  ;;  %p722_p9 = scmp.lt.u32.totalorder %s720_s9, %s715_s6 }
  0x35   : > { %p724_p2 = scmp.lt.u32.totalorder %s715_s6, %s938_s4 }
  0x36   : > { %p719_p5 = pneg %p718_p3  ;;  %p723_p11 = por %p722_p9, %p721_p7 }
  0x38   : > { %p725_p1 = por %p724_p2, %p723_p11 }
  0x3a   : > { %p726_p4 = pnand %p725_p1, %p719_p5 }
  0x3c   : > { %729 = shalt.err (!%p726_p4)
}
  0x3d   : > { %s730_s27 = scalar_lea.vmem %s944_s25, 512  ;;  %s820_s28 = smov [#allocation2]  }
  0x3e   : > { %p731_p6 = scmp.ne.s32.totalorder %s944_s25, %s730_s27  ;;  %s735_s29 = sshll.u32 %s820_s28, 4  ;;  %s736_s29 = int_to_ptr.vmem [resolvable:$false] %s735_s29 }
  0x3f   : > { %s737_s23 = scalar_lea.vmem %s736_s29, 1024  ;;  %p738_p3 = scmp.lt.s32.totalorder %s944_s25, %s736_s29 }
  0x40   : > { %p733_p8 = pnand %p731_p6, %p717_p0  ;;  %p739_p7 = scmp.lt.s32.totalorder %s737_s23, %s730_s27 }
  0x42   : > { %p734_p13 = pneg %p733_p8  ;;  %p740_p9 = por %p739_p7, %p738_p3 }
  0x44   : > { %p741_p11 = pnand %p740_p9, %p734_p13 }
  0x46   : > { %744 = shalt.err (!%p741_p11)
}
  0x47   : > { %s821_s30 = smov 128   ;;  %s822_s22 = smov 8  }
  0x48   : > { %617 = dma.hbm_to_vmem [thread:$0]  (!%p940_p10), %s938_s4, 512, %s944_s25, %s946_s5, %s821_s30, %s821_s30, %s822_s22  }
  0x49   : > { %p1065_p0 = scmp.ne.s32.totalorder %s1060_s20, 0 }
  0x4a   : > { %s977_s6 = sand.u32 (!%p1065_p0), 1, %s807_s13   ;;  %p1066_p5 = scmp.ne.s32.totalorder (!%p1065_p0), %s1058_s18, 0 }
  0x4b   : > { %172 = sbr.rel (%p1065_p0) target bundleno = 353 (0x161), region = 32  ;;  %s526_s7 = sshll.u32 (!%p1065_p0), %s977_s6, 5 }
  0x4c   : > { %s175_s8 = scalar_lea.sflag (!%p1065_p0), [#allocation3], %s977_s6  ;;  %s983_s9 = scalar_lea.vmem (!%p1065_p0), [#allocation2], %s526_s7 }
  0x52   : > { %790 = dma.done.wait (%p1066_p5), %s175_s8, 512  }
  0x53   : > { %792 = vsyncadd (%p1066_p5), %s175_s8, 4294966784  ;;  %p1067_p10 = scmp.eq.s32.totalorder %s867_s16, 0 }
  0x55   : > { %794 = dma.done.wait (%p1067_p10), [#allocation6], 2048   ;;  %p1068_p2 = pmov %p1067_p10 }
  0x56   : > { %v665_v0 = vld [vmem:[#allocation5 + $0x40] sm:$0xff]   ;;  %v667_v2 = vld [vmem:[#allocation5 + $0x48] sm:$0xff]   ;;  %v669_v4 = vld [vmem:[#allocation5 + $0x50] sm:$0xff]   ;;  %s204_s4 = scalar_lea.vmem [#allocation7], %s526_s7  ;;  %s557_s26 = sshll.u32 %s867_s16, 9 }
  0x57   : > { %796 = vsyncadd (%p1068_p2), [#allocation6], 4294965248  ;;  %v666_v1 = vld [vmem:[#allocation5] sm:$0xff]   ;;  %558 = vmatprep.subr.bf16.mxu0 %v665_v0  ;;  %586 = vmatprep.subr.bf16.mxu1 %v665_v0  ;;  %v668_v3 = vld [vmem:[#allocation5 + $0x8] sm:$0xff]   ;;  %s434_s25 = sshll.u32 %s204_s4, 4  ;;  %s1008_s11 = scalar_lea.hbm %s1054_s3, %s557_s26  ;;  %s1003_s25 = int_to_ptr.vmem [resolvable:$true] %s434_s25 }
  0x58   : > { %559 = vmatpush3.bf16.msra.mxu0 %v666_v1  ;;  %594 = vmatpush3.bf16.msra.mxu1 %v666_v1  ;;  %v670_v5 = vld [vmem:[#allocation5 + $0x10] sm:$0xff]   ;;  %v671_v6 = vld [vmem:[#allocation5 + $0x58] sm:$0xff]   ;;  %v673_v8 = vld [vmem:[#allocation5 + $0x60] sm:$0xff]   ;;  %s421_s16 = scalar_lea.sflag [#allocation4], %s977_s6  ;;  %s745_s27 = scalar_lea.vmem %s1003_s25, 512 }
  0x59   : > { %560 = vmatprep.subr.bf16.mxu0 %v667_v2  ;;  %587 = vmatprep.subr.bf16.mxu1 %v667_v2  ;;  %v672_v7 = vld [vmem:[#allocation5 + $0x18] sm:$0xff]   ;;  %v674_v9 = vld [vmem:[#allocation5 + $0x20] sm:$0xff]   ;;  %v675_v10 = vld [vmem:[#allocation5 + $0x68] sm:$0xff]   ;;  %p746_p1 = scmp.ne.s32.totalorder %s1003_s25, %s745_s27  ;;  %s823_s28 = smov [#allocation7]  }
  0x5a   : > { %v683_v11 = vld [vmem:[%s983_s9 + $0x4] ss:$8 sps:$4 sm:$0xff]   ;;  %v686_v12 = vld [vmem:[%s983_s9 + $0x14] ss:$8 sps:$4 sm:$0xff]   ;;  %v681_v18 = vld [vmem:[%s983_s9] ss:$8 sps:$4 sm:$0xff]  }
  0x5b   : > { %v676_v13 = vld [vmem:[#allocation5 + $0x28] sm:$0xff]   ;;  %v677_v14 = vld [vmem:[#allocation5 + $0x70] sm:$0xff]   ;;  %399 = vmatprep.mubr.bf16.mxu0 %v683_v11  ;;  %407 = vmatprep.mubr.bf16.mxu1 %v686_v12  ;;  %v679_v16 = vld [vmem:[#allocation5 + $0x78] sm:$0xff]   ;;  %p747_p4 = pnand %p746_p1, %p929_p12  ;;  %s749_s29 = sshll.u32 %s823_s28, 4  ;;  %s750_s29 = int_to_ptr.vmem [resolvable:$false] %s749_s29 }
  0x5c   : > { %561 = vmatpush3.bf16.msra.mxu0 %v668_v3  ;;  %595 = vmatpush3.bf16.msra.mxu1 %v668_v3  ;;  %v678_v15 = vld [vmem:[#allocation5 + $0x30] sm:$0xff]   ;;  %v680_v17 = vld [vmem:[#allocation5 + $0x38] sm:$0xff]   ;;  %v529_v22 = vld [vmem:[%s1053_s2] ss:$0 sm:$0xff]  ;;  %s751_s23 = scalar_lea.vmem %s750_s29, 1024  ;;  %p752_p8 = scmp.lt.s32.totalorder %s1003_s25, %s750_s29 }
  0x5d   : > { %562 = vmatprep.subr.bf16.mxu0 %v669_v4  ;;  %588 = vmatprep.subr.bf16.mxu1 %v669_v4  ;;  %v684_v19 = vld [vmem:[%s983_s9 + $0x10] ss:$8 sps:$4 sm:$0xff]   ;;  %p748_p6 = pneg %p747_p4  ;;  %p753_p13 = scmp.lt.s32.totalorder %s751_s23, %s745_s27 }
  0x5f   : > { %p754_p3 = por %p753_p13, %p752_p8 }
  0x60   : > { %563 = vmatpush3.bf16.msra.mxu0 %v670_v5  ;;  %596 = vmatpush3.bf16.msra.mxu1 %v670_v5 }
  0x61   : > { %564 = vmatprep.subr.bf16.mxu0 %v671_v6  ;;  %589 = vmatprep.subr.bf16.mxu1 %v671_v6  ;;  %p755_p7 = pnand %p754_p3, %p748_p6 }
  0x64   : > { %565 = vmatpush3.bf16.msra.mxu0 %v672_v7  ;;  %597 = vmatpush3.bf16.msra.mxu1 %v672_v7 }
  0x65   : > { %566 = vmatprep.subr.bf16.mxu0 %v673_v8  ;;  %590 = vmatprep.subr.bf16.mxu1 %v673_v8 }
  0x68   : > { %567 = vmatpush3.bf16.msra.mxu0 %v674_v9  ;;  %598 = vmatpush3.bf16.msra.mxu1 %v674_v9 }
  0x69   : > { %568 = vmatprep.subr.bf16.mxu0 %v675_v10  ;;  %591 = vmatprep.subr.bf16.mxu1 %v675_v10 }
  0x6c   : > { %569 = vmatpush3.bf16.msra.mxu0 %v676_v13  ;;  %599 = vmatpush3.bf16.msra.mxu1 %v676_v13 }
  0x6d   : > { %570 = vmatprep.subr.bf16.mxu0 %v677_v14  ;;  %592 = vmatprep.subr.bf16.mxu1 %v677_v14 }
  0x70   : > { %571 = vmatpush3.bf16.msra.mxu0 %v678_v15  ;;  %600 = vmatpush3.bf16.msra.mxu1 %v678_v15 }
  0x71   : > { %572 = vmatprep.subr.bf16.mxu0 %v679_v16  ;;  %593 = vmatprep.subr.bf16.mxu1 %v679_v16 }
  0x74   : > { %573 = vmatpush3.bf16.msra.mxu0 %v680_v17  ;;  %601 = vmatpush3.bf16.msra.mxu1 %v680_v17 }
  0x77   : > { %400 = vmatmul.mubr.bf16.vlgmr.msra.gmra.mrb[0].mxu0 %v681_v18  ;;  %408 = vmatmul.mubr.bf16.vlgmr.msra.gmra.mrb[0].mxu1 %v684_v19 }
 0x14a   : > { %v574_v20 = vpop.f32.mrb[0].mxu0  ;;  %v580_v21 = vpop.f32.mrb[0].mxu1 }
 0x14b   : > { %v575_v23 = vpop.f32.mrb[1].mxu0  ;;  %v581_v24 = vpop.f32.mrb[1].mxu1 }
 0x14c   : > { %v576_v25 = vadd.f32 %v575_v23, %v574_v20  ;;  %v582_v26 = vadd.f32 %v581_v24, %v580_v21  ;;  %v577_v27 = vpop.f32.mrb[2].mxu0  ;;  %v583_v28 = vpop.f32.mrb[2].mxu1 }
 0x14d   : > { %v578_v29 = vpop.f32.mrb[3].mxu0  ;;  %v584_v30 = vpop.f32.mrb[3].mxu1 }
 0x14e   : > { %v402_v31 = vadd.f32 %v576_v25, %v529_v22  ;;  %v410_v32 = vadd.f32 %v582_v26, %v529_v22  ;;  %v579_v33 = vadd.f32 %v578_v29, %v577_v27  ;;  %v585_v34 = vadd.f32 %v584_v30, %v583_v28 }
 0x150   : > { %416 = vst [vmem:[%s204_s4] sm:$0xff] %v402_v31  ;;  %418 = vst [vmem:[%s204_s4 + $0x10] sm:$0xff] %v410_v32  ;;  %v405_v35 = vadd.f32 %v579_v33, %v529_v22  ;;  %v413_v36 = vadd.f32 %v585_v34, %v529_v22 }
 0x152   : > { %417 = vst [vmem:[%s204_s4 + $0x8] sm:$0xff] %v405_v35  ;;  %419 = vst [vmem:[%s204_s4 + $0x18] sm:$0xff] %v413_v36 }
 0x153   : > { %758 = shalt.err (!%p755_p7)
}
 0x154   : > { %s759_s30 = scalar_lea.hbm %s1008_s11, 512  ;;  %s763_s8 = scalar_lea.hbm %s1054_s3, 2048 }
 0x155   : > { %p760_p9 = scmp.ne.s32.totalorder %s1008_s11, %s759_s30  ;;  %p764_p5 = scmp.lt.u32.totalorder %s1008_s11, %s1054_s3 }
 0x156   : > { %p765_p10 = scmp.lt.u32.totalorder %s763_s8, %s759_s30  ;;  %p767_p1 = scmp.lt.u32.totalorder %s759_s30, %s1008_s11 }
 0x157   : > { %p761_p11 = pnand %p760_p9, %p929_p12 }
 0x158   : > { %p766_p2 = por %p765_p10, %p764_p5 }
 0x159   : > { %p762_p0 = pneg %p761_p11 }
 0x15a   : > { %p768_p4 = por %p767_p1, %p766_p2 }
 0x15c   : > { %p769_p6 = pnand %p768_p4, %p762_p0 }
 0x15e   : > { %772 = shalt.err (!%p769_p6)
}
 0x15f   : > { %s824_s20 = smov 128   ;;  %s825_s4 = smov 8  }
 0x160   : > { %608 = dma.vmem_to_hbm [thread:$0]  (%p929_p12), %s1003_s25, 512, %s1008_s11, %s421_s16, %s824_s20, %s824_s20, %s825_s4  }
 0x161 PF: > { %p625_p8 = scmp.ge.s32.totalorder %s815_s15, 2  ;;  %s449_s26 = sand.u32 1, %s803_s12  }
 0x162   : > { %p1069_p13 = scmp.ne.s32.totalorder %s1059_s19, 0  ;;  %s450_s5 = scalar_lea.sflag [#allocation4], %s449_s26 }
 0x164   : > { %p619_p3 = pnand %p625_p8, %p1069_p13 }
 0x166   : > { %798 = dma.done.wait (!%p619_p3), %s450_s5, 512  }
 0x167   : > { %800 = vsyncadd (!%p619_p3), %s450_s5, 4294966784  ;;  %p17_p7 = scmp.ge.s32.totalorder %s899_s24, 6   ;;  %s1070_s12 = smov %s807_s13 }
 0x168   : > { %s1071_s13 = smov %s811_s14  ;;  %s1072_s14 = smov %s925_s17 }
 0x169   : > { %s1073_s15 = smov %s899_s24  ;;  %19 = sbr.rel (!%p17_p7) target bundleno = 6 (0x6), region = 81 }
 0x170   :  { %455 = vsyncpa [#allocation3], 1 }
 0x171   :  { %457 = vsyncpa [#allocation3 + $0x1], 1 }
 0x172   :  { %458 = vsyncpa [#allocation6], 1 }
 0x173   :  { %459 = vsyncpa [#allocation4], 1 }
 0x174   :  { %461 = vsyncpa [#allocation4 + $0x1], 1 }

</bundles_post_ra>
